<compile_context>
chip_gen: v7x
topology: tpu7x:2x2x1
jax: 0.10.0
libtpu: 0.0.40
codegen_flags: <defaults>
</compile_context>

<pallas_src>
import functools

import jax
import jax.numpy as jnp
from jax.experimental import pallas as pl
from jax.experimental.pallas import tpu as pltpu


def _round_up(n, m):
    return (n + m - 1) // m * m


# ----------------------------------------------------------------------------
# Fused kernel: one (batch, row-tile) grid step of the whole layer stack.
# ----------------------------------------------------------------------------

def _egen_kernel(x_hbm, wp_ref, cb_ref, g_ref, be_ref, lw_ref, lb_ref, o_ref,
                 xw_ref, copy_sem, *, n_layers, H, T, RT, HALO, W, pack3):
    # x_hbm : (B, HALO + Tpad + HALO, Hp) f32 halo-padded sequences (HBM / ANY)
    # wp    : bf16 conv weights: pack3 -> (n_layers, Hp, Hp) with rows
    #         [0:H)=center tap, [H:2H)=left tap, [2H:3H)=right tap;
    #         otherwise (n_layers, 3, Hp, Hp).
    # cb/g/be: (n_layers, 1, Hp) f32   conv bias / LN gamma / LN beta
    # lw/lb : (1, Hp) / (1, 1) f32     linear head (dout == 1)
    # o_ref : (1, RT, 1) f32           central rows of this tile
    # xw_ref: (W, Hp) f32 VMEM scratch, W = RT + 2*HALO
    b = pl.program_id(0)
    j = pl.program_id(1)
    Hp = xw_ref.shape[-1]

    # --- manual DMA of this tile's halo'd row window (windows of consecutive
    # tiles overlap by 2*HALO rows, which blocked index_maps cannot express).
    start = pl.multiple_of(j * RT, RT)
    cp = pltpu.make_async_copy(x_hbm.at[b, pl.ds(start, W)], xw_ref, copy_sem)
    cp.start()
    cp.wait()
    # TODO(synk): double-buffer this window DMA (prefetch (b, j+1) while
    # computing (b, j)) to hide the HBM load at production sequence lengths.

    x = xw_ref[...]                                            # (W, Hp) f32

    # Absolute time index of every window row, as a cheap (W, 1) column.
    t_col = jax.lax.broadcasted_iota(jnp.int32, (W, 1), 0) + (j * RT - HALO)
    seq_mask = jnp.logical_and(t_col >= 0, t_col < T)          # real rows

    lane_mask = None
    if H != Hp:   # LN statistics over the H real channels only
        lane_mask = (jax.lax.broadcasted_iota(jnp.int32, (1, Hp), 1)
                     < H).astype(jnp.float32)

    inv_h = 1.0 / float(H)

    for i in range(n_layers):                                  # static unroll
        d = 2 * i + 1                                          # dilation
        zrow = jnp.zeros((d, Hp), jnp.float32)
        # Shifted neighbours: xl[r] = x[r-d], xr[r] = x[r+d].  Window-edge fill
        # is "don't care" (only halo rows see it and they are never emitted);
        # true sequence-boundary zero padding is enforced by seq_mask below.
        xl = jnp.concatenate([zrow, x[:W - d, :]], axis=0)
        xr = jnp.concatenate([x[d:, :], zrow], axis=0)

        if pack3:
            # All three taps in one MXU push: lanes = [x(t)|x(t-d)|x(t+d)|0].
            xc = jnp.concatenate(
                [x[:, :H], xl[:, :H], xr[:, :H],
                 jnp.zeros((W, Hp - 3 * H), jnp.float32)], axis=-1)
            y = jnp.dot(xc.astype(jnp.bfloat16), wp_ref[i],
                        preferred_element_type=jnp.float32)
        else:
            y = (jnp.dot(x.astype(jnp.bfloat16), wp_ref[i, 1],
                         preferred_element_type=jnp.float32)
                 + jnp.dot(xl.astype(jnp.bfloat16), wp_ref[i, 0],
                           preferred_element_type=jnp.float32)
                 + jnp.dot(xr.astype(jnp.bfloat16), wp_ref[i, 2],
                           preferred_element_type=jnp.float32))
        y = y + cb_ref[i]

        # LayerNorm over the H real channels (two-pass, f32; padded lanes of y
        # are exactly zero by construction, variance is lane-masked).
        mu = jnp.sum(y, axis=-1, keepdims=True) * inv_h
        yc = y - mu
        ycm = yc if lane_mask is None else yc * lane_mask
        var = jnp.sum(yc * ycm, axis=-1, keepdims=True) * inv_h
        yn = yc * jax.lax.rsqrt(var + 1e-5) * g_ref[i] + be_ref[i]

        # residual + ReLU (dropout = identity at inference).  Rows outside the
        # real sequence are forced back to zero, so the next layer's dilated
        # taps see exact zero padding at both sequence ends (and padded tail
        # rows never pollute real rows across row tiles).
        x = jnp.where(seq_mask, x + jnp.maximum(yn, 0.0), 0.0)

    # Linear head (dout = 1): lane-reduce instead of a 128-wide matmul slab,
    # and store only this tile's central RT rows as a narrow column.
    head = jnp.sum(x * lw_ref[...], axis=-1, keepdims=True) + lb_ref[...]
    o_ref[0] = head[HALO:HALO + RT, :].astype(o_ref.dtype)


# ----------------------------------------------------------------------------
# One-time weight packing (lane-dense, bf16 matmul operands, f32 LN params).
# ----------------------------------------------------------------------------

def prepare_egenerator_params(params, hp):
    H = int(hp["hidden_size"])
    n_layers = hp["mel_layers"] // 2
    Hp = _round_up(max(H, 128), 128)
    pack3 = (3 * H <= 128) and (Hp == 128)

    if pack3:
        wp = jnp.zeros((n_layers, Hp, Hp), jnp.bfloat16)
    else:
        wp = jnp.zeros((n_layers, 3, Hp, Hp), jnp.bfloat16)
    cb = jnp.zeros((n_layers, 1, Hp), jnp.float32)
    g = jnp.zeros((n_layers, 1, Hp), jnp.float32)
    be = jnp.zeros((n_layers, 1, Hp), jnp.float32)
    for i, blk in enumerate(params["layers1"]):
        w = blk["w"].astype(jnp.bfloat16)                 # (3, H, H), used as x @ w[k]
        if pack3:
            wp = wp.at[i, 0:H, :H].set(w[1])              # center tap  x[t]
            wp = wp.at[i, H:2 * H, :H].set(w[0])          # left tap    x[t-d]
            wp = wp.at[i, 2 * H:3 * H, :H].set(w[2])      # right tap   x[t+d]
        else:
            wp = wp.at[i, :, :H, :H].set(w)
        cb = cb.at[i, 0, :H].set(blk["b"])
        g = g.at[i, 0, :H].set(blk["g"])
        be = be.at[i, 0, :H].set(blk["beta"])

    assert params["lin_w"].shape[1] == 1, "EGenerator head is Linear(H, 1)"
    lw = jnp.zeros((1, Hp), jnp.float32).at[0, :H].set(params["lin_w"][:, 0])
    lb = params["lin_b"].reshape(1, 1).astype(jnp.float32)

    return dict(wp=wp, cb=cb, g=g, be=be, lw=lw, lb=lb,
                H=H, Hp=Hp, n_layers=n_layers, pack3=pack3)


# ----------------------------------------------------------------------------
# Forward wrapper: halo-pad the activations, launch the row-tiled grid.
# ----------------------------------------------------------------------------

def egenerator_forward(x, prep, *, row_tile=512):
    """x: (B, T, H) channels-last (the PyTorch module's transpose(1, 2) NCT
    plumbing is folded into channels-last matmuls).  `row_tile` ~512 suits
    v5e/v6e (128 MiB VMEM); ~256 is plenty for v7x's 64 MiB."""
    B, T, H = x.shape
    assert H == prep["H"]
    n_layers, Hp, pack3 = prep["n_layers"], prep["Hp"], prep["pack3"]

    # receptive-field halo of the whole stack: sum of dilations = n_layers^2
    HALO = _round_up(max(n_layers * n_layers, 1), 8)
    RT = min(_round_up(row_tile, 8), _round_up(T, 8))
    n_tiles = pl.cdiv(T, RT)
    Tpad = n_tiles * RT
    W = RT + 2 * HALO

    # halo-padded, lane-dense activation layout: (B, HALO + Tpad + HALO, Hp)
    xh = jnp.zeros((B, HALO + Tpad + HALO, Hp), jnp.float32)
    xh = xh.at[:, HALO:HALO + T, :H].set(x.astype(jnp.float32))

    kern = functools.partial(_egen_kernel, n_layers=n_layers, H=H, T=T, RT=RT,
                             HALO=HALO, W=W, pack3=pack3)

    def full(a):  # whole-array, VMEM-resident operand (constant block index)
        return pl.BlockSpec(a.shape, lambda b, j, nd=a.ndim: (0,) * nd)

    out = pl.pallas_call(
        kern,
        out_shape=jax.ShapeDtypeStruct((B, Tpad, 1), jnp.float32),
        grid=(B, n_tiles),
        in_specs=[
            pl.BlockSpec(memory_space=pl.ANY),      # halo'd activations (HBM)
            full(prep["wp"]), full(prep["cb"]), full(prep["g"]),
            full(prep["be"]), full(prep["lw"]), full(prep["lb"]),
        ],
        out_specs=pl.BlockSpec((1, RT, 1), lambda b, j: (b, j, 0)),
        scratch_shapes=[pltpu.VMEM((W, Hp), jnp.float32),
                        pltpu.SemaphoreType.DMA],
        compiler_params=pltpu.CompilerParams(
            dimension_semantics=("parallel", "parallel"),
            vmem_limit_bytes=48 * 1024 * 1024),
    )(xh, prep["wp"], prep["cb"], prep["g"], prep["be"], prep["lw"], prep["lb"])

    return out[:, :T, :].astype(x.dtype)


# ----------------------------------------------------------------------------
# Pure-JAX reference (same assumed ConvLNBlock) for correctness checking.
# ----------------------------------------------------------------------------

def egenerator_ref(x, params, hp):
    B, T, H = x.shape
    n_layers = hp["mel_layers"] // 2
    xf = x.astype(jnp.float32)
    for i in range(n_layers):
        d = 2 * i + 1
        blk = params["layers1"][i]
        xp = jnp.pad(xf, ((0, 0), (d, d), (0, 0)))
        y = (jnp.einsum("btc,cd->btd", xp[:, 0:T], blk["w"][0])
             + jnp.einsum("btc,cd->btd", xp[:, d:d + T], blk["w"][1])
             + jnp.einsum("btc,cd->btd", xp[:, 2 * d:2 * d + T], blk["w"][2])
             + blk["b"])
        mu = jnp.mean(y, axis=-1, keepdims=True)
        var = jnp.mean((y - mu) ** 2, axis=-1, keepdims=True)
        yn = (y - mu) * jax.lax.rsqrt(var + 1e-5) * blk["g"] + blk["beta"]
        xf = xf + jnp.maximum(yn, 0.0)
    return jnp.einsum("btc,cd->btd", xf, params["lin_w"]) + params["lin_b"]


# ----------------------------------------------------------------------------
# Deterministic parameter construction
# ----------------------------------------------------------------------------

def init_egenerator_params(key, hp):
    H = hp["hidden_size"]
    n_layers = hp["mel_layers"] // 2
    keys = jax.random.split(key, 4 * n_layers + 2)
    layers = []
    for i in range(n_layers):
        k = keys[4 * i:4 * i + 4]
        layers.append({
            "w": jax.random.normal(k[0], (3, H, H), jnp.float32) * 0.05,
            "b": jax.random.normal(k[1], (H,), jnp.float32) * 0.02,
            "g": 1.0 + jax.random.normal(k[2], (H,), jnp.float32) * 0.02,
            "beta": jax.random.normal(k[3], (H,), jnp.float32) * 0.02,
        })
    return {
        "layers1": layers,
        "lin_w": jax.random.normal(keys[-2], (H, 1), jnp.float32) * 0.05,
        "lin_b": jax.random.normal(keys[-1], (1,), jnp.float32) * 0.02,
    }


# ----------------------------------------------------------------------------
# Demo
# ----------------------------------------------------------------------------

if __name__ == "__main__":
    hp = dict(hidden_size=32, dropout=0.1, mel_layers=4)   # 2 ConvLNBlocks (d=1,3)
    key = jax.random.PRNGKey(0)
    kp, kx1, kx2 = jax.random.split(key, 3)
    params = init_egenerator_params(kp, hp)
    prep = prepare_egenerator_params(params, hp)            # one-time packing

    # Case 1: single row tile per sequence.
    B, T = 2, 8
    x1 = jax.random.normal(kx1, (B, T, hp["hidden_size"]), jnp.float32)
    out1 = jax.block_until_ready(egenerator_forward(x1, prep))
    assert out1.shape == (B, T, 1), out1.shape
    assert bool(jnp.all(jnp.isfinite(out1)))
    ref1 = egenerator_ref(x1, params, hp)
    err1 = float(jnp.max(jnp.abs(out1 - ref1)))
    assert jnp.allclose(out1, ref1, rtol=5e-2, atol=5e-2), err1

    # Case 2: multi-tile row grid (3 tiles of 16 rows, halo recompute between
    # tiles, padded tail in the last tile).
    T2 = 40
    x2 = jax.random.normal(kx2, (B, T2, hp["hidden_size"]), jnp.float32)
    out2 = jax.block_until_ready(egenerator_forward(x2, prep, row_tile=16))
    assert out2.shape == (B, T2, 1), out2.shape
    ref2 = egenerator_ref(x2, params, hp)
    err2 = float(jnp.max(jnp.abs(out2 - ref2)))
    assert jnp.allclose(out2, ref2, rtol=5e-2, atol=5e-2), err2

    print("KERNEL_OK")
</pallas_src>

<mosaic_0001>
module attributes {stable_mosaic.version = 11 : i64} {
  func.func @_egen_kernel(%arg0: i32, %arg1: i32, %arg2: memref<2x24x128xf32, #tpu.memory_space<any>>, %arg3: memref<2x128x128xbf16, #tpu.memory_space<vmem>>, %arg4: memref<2x1x128xf32, #tpu.memory_space<vmem>>, %arg5: memref<2x1x128xf32, #tpu.memory_space<vmem>>, %arg6: memref<2x1x128xf32, #tpu.memory_space<vmem>>, %arg7: memref<1x128xf32, #tpu.memory_space<vmem>>, %arg8: memref<1x1xf32, #tpu.memory_space<vmem>>, %arg9: memref<1x8x1xf32, #tpu.memory_space<vmem>>, %arg10: memref<24x128xf32, #tpu.memory_space<vmem>>, %arg11: memref<!tpu.dma_semaphore, #tpu.memory_space<semaphore_mem>>) attributes {dimension_semantics = [#tpu.dimension_semantics<parallel>, #tpu.dimension_semantics<parallel>], iteration_bounds = array<i64: 2, 1>, scalar_prefetch = 0 : i64, scratch_operands = 2 : i64, tpu.core_type = #tpu.core_type<tc>, window_params = [{}, {pipeline_mode = #tpu.pipeline_mode<synchronous>, transform_indices = @transform_1, window_bounds = array<i64: 2, 128, 128>}, {pipeline_mode = #tpu.pipeline_mode<synchronous>, transform_indices = @transform_2, window_bounds = array<i64: 2, 1, 128>}, {pipeline_mode = #tpu.pipeline_mode<synchronous>, transform_indices = @transform_3, window_bounds = array<i64: 2, 1, 128>}, {pipeline_mode = #tpu.pipeline_mode<synchronous>, transform_indices = @transform_4, window_bounds = array<i64: 2, 1, 128>}, {pipeline_mode = #tpu.pipeline_mode<synchronous>, transform_indices = @transform_5, window_bounds = array<i64: 1, 128>}, {pipeline_mode = #tpu.pipeline_mode<synchronous>, transform_indices = @transform_6, window_bounds = array<i64: 1, 1>}, {transform_indices = @transform_7, window_bounds = array<i64: 1, 8, 1>}]} {
    %c8_i32 = arith.constant 8 : i32
    %0 = arith.muli %arg1, %c8_i32 : i32
    %1 = tpu.assume_multiple %0, 8 : i32
    %c0_i32 = arith.constant 0 : i32
    %2 = tpu.memref_slice %arg2[%arg0, %1, %c0_i32] : memref<2x24x128xf32, #tpu.memory_space<any>> -> memref<1x24x128xf32, #tpu.memory_space<any>>
    %3 = tpu.memref_squeeze %2 : memref<1x24x128xf32, #tpu.memory_space<any>> -> memref<24x128xf32, #tpu.memory_space<any>>
    tpu.enqueue_dma source(%3 : memref<24x128xf32, #tpu.memory_space<any>>) target(%arg10 : memref<24x128xf32, #tpu.memory_space<vmem>>) target_semaphore(%arg11 : memref<!tpu.dma_semaphore, #tpu.memory_space<semaphore_mem>>)
    %c0_i32_0 = arith.constant 0 : i32
    %4 = tpu.memref_slice %arg2[%arg0, %1, %c0_i32_0] : memref<2x24x128xf32, #tpu.memory_space<any>> -> memref<1x24x128xf32, #tpu.memory_space<any>>
    %5 = tpu.memref_squeeze %4 : memref<1x24x128xf32, #tpu.memory_space<any>> -> memref<24x128xf32, #tpu.memory_space<any>>
    tpu.wait_dma2 semaphore(%arg11 : memref<!tpu.dma_semaphore, #tpu.memory_space<semaphore_mem>>) src(%5 : memref<24x128xf32, #tpu.memory_space<any>>) dst(%arg10 : memref<24x128xf32, #tpu.memory_space<vmem>>)
    %c0 = arith.constant 0 : index
    %c0_1 = arith.constant 0 : index
    %6 = vector.load %arg10[%c0, %c0_1] : memref<24x128xf32, #tpu.memory_space<vmem>>, vector<24x128xf32>
    %7 = tpu.iota {dimensions = array<i32: 0>} : vector<24x1xi32>
    %c8_i32_2 = arith.constant 8 : i32
    %8 = arith.muli %arg1, %c8_i32_2 : i32
    %c8_i32_3 = arith.constant 8 : i32
    %9 = arith.subi %8, %c8_i32_3 : i32
    %10 = vector.broadcast %9 : i32 to vector<24x1xi32>
    %11 = arith.addi %7, %10 : vector<24x1xi32>
    %c0_i32_4 = arith.constant 0 : i32
    %12 = vector.broadcast %c0_i32_4 : i32 to vector<24x1xi32>
    %13 = arith.cmpi sge, %11, %12 : vector<24x1xi32>
    %c8_i32_5 = arith.constant 8 : i32
    %14 = vector.broadcast %c8_i32_5 : i32 to vector<24x1xi32>
    %15 = arith.cmpi slt, %11, %14 : vector<24x1xi32>
    %16 = arith.andi %13, %15 : vector<24x1xi1>
    %17 = tpu.iota {dimensions = array<i32: 1>} : vector<1x128xi32>
    %c32_i32 = arith.constant 32 : i32
    %18 = vector.broadcast %c32_i32 : i32 to vector<1x128xi32>
    %19 = arith.cmpi slt, %17, %18 : vector<1x128xi32>
    %20 = arith.extui %19 : vector<1x128xi1> to vector<1x128xi32>
    %21 = arith.sitofp %20 : vector<1x128xi32> to vector<1x128xf32>
    %cst = arith.constant 0.000000e+00 : f32
    %22 = vector.broadcast %cst : f32 to vector<1x128xf32>
    %23 = vector.extract_strided_slice %6 {offsets = [0, 0], sizes = [23, 128], strides = [1, 1]} : vector<24x128xf32> to vector<23x128xf32>
    %24 = tpu.concatenate %22, %23 in 0 : vector<1x128xf32>, vector<23x128xf32> -> vector<24x128xf32>
    %25 = vector.extract_strided_slice %6 {offsets = [1, 0], sizes = [23, 128], strides = [1, 1]} : vector<24x128xf32> to vector<23x128xf32>
    %26 = tpu.concatenate %25, %22 in 0 : vector<23x128xf32>, vector<1x128xf32> -> vector<24x128xf32>
    %27 = vector.extract_strided_slice %6 {offsets = [0, 0], sizes = [24, 32], strides = [1, 1]} : vector<24x128xf32> to vector<24x32xf32>
    %28 = vector.extract_strided_slice %24 {offsets = [0, 0], sizes = [24, 32], strides = [1, 1]} : vector<24x128xf32> to vector<24x32xf32>
    %29 = vector.extract_strided_slice %26 {offsets = [0, 0], sizes = [24, 32], strides = [1, 1]} : vector<24x128xf32> to vector<24x32xf32>
    %cst_6 = arith.constant 0.000000e+00 : f32
    %30 = vector.broadcast %cst_6 : f32 to vector<24x32xf32>
    %31 = tpu.concatenate %27, %28, %29, %30 in 1 : vector<24x32xf32>, vector<24x32xf32>, vector<24x32xf32>, vector<24x32xf32> -> vector<24x128xf32>
    %32 = arith.truncf %31 : vector<24x128xf32> to vector<24x128xbf16>
    %c0_7 = arith.constant 0 : index
    %c0_8 = arith.constant 0 : index
    %c0_9 = arith.constant 0 : index
    %33 = vector.load %arg3[%c0_7, %c0_8, %c0_9] : memref<2x128x128xbf16, #tpu.memory_space<vmem>>, vector<1x128x128xbf16>
    %34 = vector.shape_cast %33 : vector<1x128x128xbf16> to vector<128x128xbf16>
    %cst_10 = arith.constant dense<0.000000e+00> : vector<24x128xf32>
    %35 = tpu.matmul %32, %34, %cst_10 {dimension_numbers = #tpu.dot_dimension_numbers<[1], [0], [0], [1], [0, 0, 1, 1], [], []>} : vector<24x128xbf16>, vector<128x128xbf16>, vector<24x128xf32> -> vector<24x128xf32>
    %c0_11 = arith.constant 0 : index
    %c0_12 = arith.constant 0 : index
    %c0_13 = arith.constant 0 : index
    %36 = vector.load %arg4[%c0_11, %c0_12, %c0_13] : memref<2x1x128xf32, #tpu.memory_space<vmem>>, vector<1x1x128xf32>
    %37 = vector.shape_cast %36 : vector<1x1x128xf32> to vector<1x128xf32>
    %38 = vector.broadcast %37 : vector<1x128xf32> to vector<24x128xf32>
    %39 = arith.addf %35, %38 : vector<24x128xf32>
    %cst_14 = arith.constant dense<0.000000e+00> : vector<24xf32>
    %40 = vector.multi_reduction <add>, %39, %cst_14 [1] : vector<24x128xf32> to vector<24xf32>
    %41 = vector.shape_cast %40 : vector<24xf32> to vector<24x1xf32>
    %cst_15 = arith.constant 3.125000e-02 : f32
    %42 = vector.broadcast %cst_15 : f32 to vector<24x1xf32>
    %43 = arith.mulf %41, %42 : vector<24x1xf32>
    %44 = vector.broadcast %43 : vector<24x1xf32> to vector<24x128xf32>
    %45 = arith.subf %39, %44 : vector<24x128xf32>
    %46 = vector.broadcast %21 : vector<1x128xf32> to vector<24x128xf32>
    %47 = arith.mulf %45, %46 : vector<24x128xf32>
    %48 = arith.mulf %45, %47 : vector<24x128xf32>
    %cst_16 = arith.constant dense<0.000000e+00> : vector<24xf32>
    %49 = vector.multi_reduction <add>, %48, %cst_16 [1] : vector<24x128xf32> to vector<24xf32>
    %50 = vector.shape_cast %49 : vector<24xf32> to vector<24x1xf32>
    %cst_17 = arith.constant 3.125000e-02 : f32
    %51 = vector.broadcast %cst_17 : f32 to vector<24x1xf32>
    %52 = arith.mulf %50, %51 : vector<24x1xf32>
    %cst_18 = arith.constant 9.99999974E-6 : f32
    %53 = vector.broadcast %cst_18 : f32 to vector<24x1xf32>
    %54 = arith.addf %52, %53 : vector<24x1xf32>
    %55 = math.rsqrt %54 : vector<24x1xf32>
    %56 = vector.broadcast %55 : vector<24x1xf32> to vector<24x128xf32>
    %57 = arith.mulf %45, %56 : vector<24x128xf32>
    %c0_19 = arith.constant 0 : index
    %c0_20 = arith.constant 0 : index
    %c0_21 = arith.constant 0 : index
    %58 = vector.load %arg5[%c0_19, %c0_20, %c0_21] : memref<2x1x128xf32, #tpu.memory_space<vmem>>, vector<1x1x128xf32>
    %59 = vector.shape_cast %58 : vector<1x1x128xf32> to vector<1x128xf32>
    %60 = vector.broadcast %59 : vector<1x128xf32> to vector<24x128xf32>
    %61 = arith.mulf %57, %60 : vector<24x128xf32>
    %c0_22 = arith.constant 0 : index
    %c0_23 = arith.constant 0 : index
    %c0_24 = arith.constant 0 : index
    %62 = vector.load %arg6[%c0_22, %c0_23, %c0_24] : memref<2x1x128xf32, #tpu.memory_space<vmem>>, vector<1x1x128xf32>
    %63 = vector.shape_cast %62 : vector<1x1x128xf32> to vector<1x128xf32>
    %64 = vector.broadcast %63 : vector<1x128xf32> to vector<24x128xf32>
    %65 = arith.addf %61, %64 : vector<24x128xf32>
    %cst_25 = arith.constant 0.000000e+00 : f32
    %66 = vector.broadcast %cst_25 : f32 to vector<24x128xf32>
    %67 = arith.maximumf %65, %66 : vector<24x128xf32>
    %68 = arith.addf %6, %67 : vector<24x128xf32>
    %cst_26 = arith.constant 0.000000e+00 : f32
    %69 = vector.shape_cast %16 : vector<24x1xi1> to vector<24x1xi1>
    %70 = vector.broadcast %69 : vector<24x1xi1> to vector<24x128xi1>
    %71 = vector.broadcast %cst_26 : f32 to vector<24x128xf32>
    %72 = arith.select %70, %68, %71 : vector<24x128xi1>, vector<24x128xf32>
    %cst_27 = arith.constant 0.000000e+00 : f32
    %73 = vector.broadcast %cst_27 : f32 to vector<3x128xf32>
    %74 = vector.extract_strided_slice %72 {offsets = [0, 0], sizes = [21, 128], strides = [1, 1]} : vector<24x128xf32> to vector<21x128xf32>
    %75 = tpu.concatenate %73, %74 in 0 : vector<3x128xf32>, vector<21x128xf32> -> vector<24x128xf32>
    %76 = vector.extract_strided_slice %72 {offsets = [3, 0], sizes = [21, 128], strides = [1, 1]} : vector<24x128xf32> to vector<21x128xf32>
    %77 = tpu.concatenate %76, %73 in 0 : vector<21x128xf32>, vector<3x128xf32> -> vector<24x128xf32>
    %78 = vector.extract_strided_slice %72 {offsets = [0, 0], sizes = [24, 32], strides = [1, 1]} : vector<24x128xf32> to vector<24x32xf32>
    %79 = vector.extract_strided_slice %75 {offsets = [0, 0], sizes = [24, 32], strides = [1, 1]} : vector<24x128xf32> to vector<24x32xf32>
    %80 = vector.extract_strided_slice %77 {offsets = [0, 0], sizes = [24, 32], strides = [1, 1]} : vector<24x128xf32> to vector<24x32xf32>
    %cst_28 = arith.constant 0.000000e+00 : f32
    %81 = vector.broadcast %cst_28 : f32 to vector<24x32xf32>
    %82 = tpu.concatenate %78, %79, %80, %81 in 1 : vector<24x32xf32>, vector<24x32xf32>, vector<24x32xf32>, vector<24x32xf32> -> vector<24x128xf32>
    %83 = arith.truncf %82 : vector<24x128xf32> to vector<24x128xbf16>
    %c1 = arith.constant 1 : index
    %c0_29 = arith.constant 0 : index
    %c0_30 = arith.constant 0 : index
    %84 = vector.load %arg3[%c1, %c0_29, %c0_30] : memref<2x128x128xbf16, #tpu.memory_space<vmem>>, vector<1x128x128xbf16>
    %85 = vector.shape_cast %84 : vector<1x128x128xbf16> to vector<128x128xbf16>
    %cst_31 = arith.constant dense<0.000000e+00> : vector<24x128xf32>
    %86 = tpu.matmul %83, %85, %cst_31 {dimension_numbers = #tpu.dot_dimension_numbers<[1], [0], [0], [1], [0, 0, 1, 1], [], []>} : vector<24x128xbf16>, vector<128x128xbf16>, vector<24x128xf32> -> vector<24x128xf32>
    %c1_32 = arith.constant 1 : index
    %c0_33 = arith.constant 0 : index
    %c0_34 = arith.constant 0 : index
    %87 = vector.load %arg4[%c1_32, %c0_33, %c0_34] : memref<2x1x128xf32, #tpu.memory_space<vmem>>, vector<1x1x128xf32>
    %88 = vector.shape_cast %87 : vector<1x1x128xf32> to vector<1x128xf32>
    %89 = vector.broadcast %88 : vector<1x128xf32> to vector<24x128xf32>
    %90 = arith.addf %86, %89 : vector<24x128xf32>
    %cst_35 = arith.constant dense<0.000000e+00> : vector<24xf32>
    %91 = vector.multi_reduction <add>, %90, %cst_35 [1] : vector<24x128xf32> to vector<24xf32>
    %92 = vector.shape_cast %91 : vector<24xf32> to vector<24x1xf32>
    %cst_36 = arith.constant 3.125000e-02 : f32
    %93 = vector.broadcast %cst_36 : f32 to vector<24x1xf32>
    %94 = arith.mulf %92, %93 : vector<24x1xf32>
    %95 = vector.broadcast %94 : vector<24x1xf32> to vector<24x128xf32>
    %96 = arith.subf %90, %95 : vector<24x128xf32>
    %97 = vector.broadcast %21 : vector<1x128xf32> to vector<24x128xf32>
    %98 = arith.mulf %96, %97 : vector<24x128xf32>
    %99 = arith.mulf %96, %98 : vector<24x128xf32>
    %cst_37 = arith.constant dense<0.000000e+00> : vector<24xf32>
    %100 = vector.multi_reduction <add>, %99, %cst_37 [1] : vector<24x128xf32> to vector<24xf32>
    %101 = vector.shape_cast %100 : vector<24xf32> to vector<24x1xf32>
    %cst_38 = arith.constant 3.125000e-02 : f32
    %102 = vector.broadcast %cst_38 : f32 to vector<24x1xf32>
    %103 = arith.mulf %101, %102 : vector<24x1xf32>
    %cst_39 = arith.constant 9.99999974E-6 : f32
    %104 = vector.broadcast %cst_39 : f32 to vector<24x1xf32>
    %105 = arith.addf %103, %104 : vector<24x1xf32>
    %106 = math.rsqrt %105 : vector<24x1xf32>
    %107 = vector.broadcast %106 : vector<24x1xf32> to vector<24x128xf32>
    %108 = arith.mulf %96, %107 : vector<24x128xf32>
    %c1_40 = arith.constant 1 : index
    %c0_41 = arith.constant 0 : index
    %c0_42 = arith.constant 0 : index
    %109 = vector.load %arg5[%c1_40, %c0_41, %c0_42] : memref<2x1x128xf32, #tpu.memory_space<vmem>>, vector<1x1x128xf32>
    %110 = vector.shape_cast %109 : vector<1x1x128xf32> to vector<1x128xf32>
    %111 = vector.broadcast %110 : vector<1x128xf32> to vector<24x128xf32>
    %112 = arith.mulf %108, %111 : vector<24x128xf32>
    %c1_43 = arith.constant 1 : index
    %c0_44 = arith.constant 0 : index
    %c0_45 = arith.constant 0 : index
    %113 = vector.load %arg6[%c1_43, %c0_44, %c0_45] : memref<2x1x128xf32, #tpu.memory_space<vmem>>, vector<1x1x128xf32>
    %114 = vector.shape_cast %113 : vector<1x1x128xf32> to vector<1x128xf32>
    %115 = vector.broadcast %114 : vector<1x128xf32> to vector<24x128xf32>
    %116 = arith.addf %112, %115 : vector<24x128xf32>
    %cst_46 = arith.constant 0.000000e+00 : f32
    %117 = vector.broadcast %cst_46 : f32 to vector<24x128xf32>
    %118 = arith.maximumf %116, %117 : vector<24x128xf32>
    %119 = arith.addf %72, %118 : vector<24x128xf32>
    %cst_47 = arith.constant 0.000000e+00 : f32
    %120 = vector.shape_cast %16 : vector<24x1xi1> to vector<24x1xi1>
    %121 = vector.broadcast %120 : vector<24x1xi1> to vector<24x128xi1>
    %122 = vector.broadcast %cst_47 : f32 to vector<24x128xf32>
    %123 = arith.select %121, %119, %122 : vector<24x128xi1>, vector<24x128xf32>
    %c0_48 = arith.constant 0 : index
    %c0_49 = arith.constant 0 : index
    %124 = vector.load %arg7[%c0_48, %c0_49] : memref<1x128xf32, #tpu.memory_space<vmem>>, vector<1x128xf32>
    %125 = vector.broadcast %124 : vector<1x128xf32> to vector<24x128xf32>
    %126 = arith.mulf %123, %125 : vector<24x128xf32>
    %cst_50 = arith.constant dense<0.000000e+00> : vector<24xf32>
    %127 = vector.multi_reduction <add>, %126, %cst_50 [1] : vector<24x128xf32> to vector<24xf32>
    %128 = vector.shape_cast %127 : vector<24xf32> to vector<24x1xf32>
    %c0_51 = arith.constant 0 : index
    %c0_52 = arith.constant 0 : index
    %129 = vector.load %arg8[%c0_51, %c0_52] : memref<1x1xf32, #tpu.memory_space<vmem>>, vector<1x1xf32>
    %130 = vector.broadcast %129 : vector<1x1xf32> to vector<24x1xf32>
    %131 = arith.addf %128, %130 : vector<24x1xf32>
    %132 = vector.extract_strided_slice %131 {offsets = [8, 0], sizes = [8, 1], strides = [1, 1]} : vector<24x1xf32> to vector<8x1xf32>
    %c0_53 = arith.constant 0 : index
    %c0_54 = arith.constant 0 : index
    %c0_55 = arith.constant 0 : index
    %133 = vector.load %arg9[%c0_53, %c0_54, %c0_55] : memref<1x8x1xf32, #tpu.memory_space<vmem>>, vector<1x8x1xf32>
    %134 = vector.shape_cast %133 : vector<1x8x1xf32> to vector<8x1xf32>
    %135 = vector.shape_cast %132 : vector<8x1xf32> to vector<1x8x1xf32>
    tpu.vector_store %arg9[%c0_53, %c0_54, %c0_55], %135 {strides = array<i32>} : memref<1x8x1xf32, #tpu.memory_space<vmem>>, vector<1x8x1xf32>,
    return
  }
  func.func @transform_1(%arg0: i32, %arg1: i32) -> (i32, i32, i32) {
    %c0_i32 = arith.constant 0 : i32
    %c0_i32_0 = arith.constant 0 : i32
    %c0_i32_1 = arith.constant 0 : i32
    %c0_i32_2 = arith.constant 0 : i32
    return %c0_i32, %c0_i32_0, %c0_i32_1 : i32, i32, i32
  }
  func.func @transform_2(%arg0: i32, %arg1: i32) -> (i32, i32, i32) {
    %c0_i32 = arith.constant 0 : i32
    %c0_i32_0 = arith.constant 0 : i32
    %c0_i32_1 = arith.constant 0 : i32
    %c0_i32_2 = arith.constant 0 : i32
    return %c0_i32, %c0_i32_0, %c0_i32_1 : i32, i32, i32
  }
  func.func @transform_3(%arg0: i32, %arg1: i32) -> (i32, i32, i32) {
    %c0_i32 = arith.constant 0 : i32
    %c0_i32_0 = arith.constant 0 : i32
    %c0_i32_1 = arith.constant 0 : i32
    %c0_i32_2 = arith.constant 0 : i32
    return %c0_i32, %c0_i32_0, %c0_i32_1 : i32, i32, i32
  }
  func.func @transform_4(%arg0: i32, %arg1: i32) -> (i32, i32, i32) {
    %c0_i32 = arith.constant 0 : i32
    %c0_i32_0 = arith.constant 0 : i32
    %c0_i32_1 = arith.constant 0 : i32
    %c0_i32_2 = arith.constant 0 : i32
    return %c0_i32, %c0_i32_0, %c0_i32_1 : i32, i32, i32
  }
  func.func @transform_5(%arg0: i32, %arg1: i32) -> (i32, i32) {
    %c0_i32 = arith.constant 0 : i32
    %c0_i32_0 = arith.constant 0 : i32
    %c0_i32_1 = arith.constant 0 : i32
    return %c0_i32, %c0_i32_0 : i32, i32
  }
  func.func @transform_6(%arg0: i32, %arg1: i32) -> (i32, i32) {
    %c0_i32 = arith.constant 0 : i32
    %c0_i32_0 = arith.constant 0 : i32
    %c0_i32_1 = arith.constant 0 : i32
    return %c0_i32, %c0_i32_0 : i32, i32
  }
  func.func @transform_7(%arg0: i32, %arg1: i32) -> (i32, i32, i32) {
    %c0_i32 = arith.constant 0 : i32
    %c0_i32_0 = arith.constant 0 : i32
    return %arg0, %arg1, %c0_i32 : i32, i32, i32
  }
}

</mosaic_0001>

<bundles_post_ra>
// kernel: tpu_custom_call.1
= control target key start
LH: loop header
LB: loop body
LE: loop exit
PB: predicated region body
PF: predicated region fallthrough
CT: control target
= control target key end

     0   :  { %s1342_s0 = inlined_call_operand.hbm [shape: f32[2,24,128], index: 0, kind: input, shape index: {}]   ;;  %s1343_s1 = inlined_call_operand.hbm [shape: bf16[2,128,128], index: 1, kind: input, shape index: {}]   ;;  %s1344_s2 = inlined_call_operand.vmem [shape: f32[2,1,128], index: 2, kind: input, shape index: {}]   ;;  %s1345_s3 = inlined_call_operand.vmem [shape: f32[2,1,128], index: 3, kind: input, shape index: {}]   ;;  %s1346_s4 = inlined_call_operand.vmem [shape: f32[2,1,128], index: 4, kind: input, shape index: {}]   ;;  %s1347_s5 = inlined_call_operand.vmem [shape: f32[1,128], index: 5, kind: input, shape index: {}]   ;;  %s1348_s6 = inlined_call_operand.<no memory space> [shape: f32[1,1], index: 6, kind: input, shape index: {}]   ;;  %s1349_s7 = inlined_call_operand.vmem [shape: f32[2,8,1], index: 7, kind: output, shape index: {}]  }
   0x1   :  { %v12_v0 = vstv %s1348_s6 }
   0x2   :  { %13 = vst [vmem:[#allocation4] sm:$0x1] %v12_v0 }
   0x3   :  { %14 = vsyncpa [#allocation6], 0  ;;  %s1187_s26 = smov 0   ;;  %s1189_s27 = smov 0  }
   0x4   :  { %s1191_s28 = smov 0  }
   0x5 LB: > { %s862_s6 = sadd.s32 4294967295, %s1135_s28   ;;  %s32_s29 = sadd.s32 1, %s1131_s27  ;;  %s1135_s28 = sphi %s1191_s28, %s20_s28   ;;  %s1131_s27 = sphi %s1189_s27, %s1361_s27   ;;  %s1127_s26 = sphi %s1187_s26, %s1360_s26  }
   0x6   : > { %p34_p0 = scmp.ge.s32.totalorder %s32_s29, 2  ;;  %p864_p1 = scmp.ge.s32.totalorder %s1135_s28, 1 }
   0x7   : > { %p191_p2 = scmp.lt.s32.totalorder %s1135_s28, 3  ;;  %p1212_p4 = scmp.eq.s32.totalorder %s862_s6, 0 }
   0x8   : > { %s1363_s29 = smov (%p34_p0, %s32_s29), 0  ;;  %s1137_s9 = smov [#allocation5]  }
   0x9   : > { %p1208_p3 = pnand %p864_p1, %p191_p2  ;;  %s203_s10 = sshll.u32 %s1137_s9, 4  ;;  %s204_s10 = int_to_ptr.vmem [resolvable:$true] %s203_s10 }
   0xa   : > { %s1354_s8 = scalar_select %p1212_p4, 1, 0 }
   0xb   : > { %s1353_s30 = scalar_select %p1208_p3, 1, 0 }
   0xc   : > { %p978_p5 = pneg %p1208_p3  ;;  %s1055_s14 = scalar_lea.hbm %s1343_s1, 2048 }
   0xd   : > { %p1056_p7 = scmp.ne.s32.totalorder %s1343_s1, %s1055_s14  ;;  %p1062_p11 = scmp.lt.u32.totalorder %s1055_s14, %s1343_s1 }
   0xe   : > { %p1220_p6 = pnand %p1212_p4, %p978_p5 }
  0x10   : > { %p1057_p8 = pneg %p1220_p6 }
  0x12   : > { %p1058_p9 = pnand %p1057_p8, %p1056_p7 }
  0x14   : > { %p1059_p10 = pneg %p1058_p9 }
  0x16   : > { %p1064_p12 = pnand %p1062_p11, %p1059_p10 }
  0x18   : > { %1067 = shalt.err (!%p1064_p12)
}
  0x19   : > { %s1068_s19 = scalar_lea.vmem %s204_s10, 2048  ;;  %p1076_p2 = scmp.lt.s32.totalorder %s204_s10, %s204_s10 }
  0x1a   : > { %p1069_p13 = scmp.ne.s32.totalorder %s204_s10, %s1068_s19  ;;  %p1077_p5 = scmp.lt.s32.totalorder %s1068_s19, %s1068_s19 }
  0x1c   : > { %p1071_p0 = pnand %p1069_p13, %p1057_p8  ;;  %p1078_p4 = por %p1077_p5, %p1076_p2 }
  0x1e   : > { %p1072_p1 = pneg %p1071_p0 }
  0x20   : > { %p1079_p3 = pnand %p1078_p4, %p1072_p1 }
  0x22   : > { %1082 = shalt.err (!%p1079_p3)
}
  0x23   : > { %s1138_s20 = smov 64   ;;  %s1139_s21 = smov 4  }
  0x24   : > { %981 = dma.hbm_to_vmem [thread:$0]  (!%p1220_p6), %s1343_s1, 2048, %s204_s10, [#allocation6], %s1138_s20, %s1138_s20, %s1139_s21  }
  0x25   : > { %p1356_p7 = scmp.ne.s32.totalorder %s1353_s30, 0 }
  0x26   : > { %p1357_p9 = scmp.ne.s32.totalorder (!%p1356_p7), %s1354_s8, 0 }
  0x27   : > { %234 = sbr.rel (%p1356_p7) target bundleno = 1546 (0x60a), region = 44 }
  0x2e   : > { %1120 = dma.done.wait (%p1357_p9), [#allocation6], 2048  }
  0x2f   : > { %1122 = vsyncadd (%p1357_p9), [#allocation6], 4294965248  ;;  %p261_p3 = scmp.lt.s32.totalorder %s1127_s26, 1  ;;  %s913_s24 = smul.u32 384, %s1127_s26 }
  0x30   : > { %s1140_s10 = smov [#allocation2]   ;;  %s1085_s17 = scalar_lea.hbm %s1342_s0, 768 }
  0x31   : > { %s1365_s26 = smov (!%p261_p3, %s1127_s26), 1  ;;  %s273_s9 = scalar_lea.hbm %s1342_s0, %s913_s24 }
  0x32   : > { %s281_s11 = sshll.u32 %s1140_s10, 4  ;;  %s868_s30 = sshll.u32 %s1365_s26, 3  ;;  %s282_s11 = int_to_ptr.vmem [resolvable:$true] %s281_s11 }
  0x33   : > { %s1255_s14 = scalar_lea.vmem %s1349_s7, %s868_s30  ;;  %s1083_s8 = scalar_lea.hbm %s273_s9, 384 }
  0x34   : > { %p1084_p4 = scmp.ne.s32.totalorder %s273_s9, %s1083_s8  ;;  %p1086_p6 = scmp.lt.u32.totalorder %s273_s9, %s1342_s0 }
  0x35   : > { %p1087_p8 = scmp.lt.u32.totalorder %s1085_s17, %s1083_s8  ;;  %p1089_p11 = scmp.lt.u32.totalorder %s1083_s8, %s273_s9 }
  0x37   : > { %p1088_p10 = por %p1087_p8, %p1086_p6 }
  0x39   : > { %p1090_p12 = por %p1089_p11, %p1088_p10 }
  0x3b   : > { %p1091_p13 = pnand %p1090_p12, %p1084_p4 }
  0x3d   : > { %1094 = shalt.err (!%p1091_p13)  }
  0x3e   : > { %s1095_s26 = scalar_lea.vmem %s282_s11, 384  ;;  %p1100_p1 = scmp.lt.s32.totalorder %s282_s11, %s282_s11 }
  0x3f   : > { %p1096_p0 = scmp.ne.s32.totalorder %s282_s11, %s1095_s26  ;;  %p1101_p2 = scmp.lt.s32.totalorder %s1095_s26, %s1095_s26 }
  0x41   : > { %p1102_p5 = por %p1101_p2, %p1100_p1 }
  0x43   : > { %p1103_p7 = pnand %p1102_p5, %p1096_p0 }
  0x45   : > { %1106 = shalt.err (!%p1103_p7)  }
  0x46   : > { %284 = dma.hbm_to_vmem [thread:$0]  %s273_s9, 384, %s282_s11, [#allocation3] }
  0x47   : > { %1123 = dma.done.wait [#allocation3], 384 }
  0x48   : > { %1124 = vsyncadd [#allocation3], 4294966912  ;;  %v288_v1 = vld [vmem:[#allocation2] sm:$0xff]  ;;  %v1263_v2 = vld [vmem:[#allocation2 + $0x8] sm:$0xff]  ;;  %vm317_vm0 = vcmask 1040384   ;;  %vm325_vm1 = vcmask 1046528   ;;  %v309_v49 = vlaneseq }
  0x49   : > { %v290_v3 = vld [vmem:[#allocation2 + $0x10] sm:$0xff]  ;;  %v318_v4 = vrot.slane %v288_v1, 7  ;;  %v319_v5 = vrot.slane %v1263_v2, 7  ;;  %v326_v6 = vrot.slane %v288_v1, 1  ;;  %v327_v7 = vrot.slane %v1263_v2, 1  ;;  %v1035_v9 = vld [vmem:[#allocation5] sm:$0xff]  }
  0x4a   : > { %v329_v8 = vrot.slane %v290_v3, 1  ;;  %v1036_v10 = vld [vmem:[#allocation5 + $0x8] sm:$0xff]   ;;  %v321_v14 = vrot.slane %v290_v3, 7  ;;  %934 = vmatprep.subr.bf16.mxu0 %v1035_v9  ;;  %s1141_s20 = smov 32   ;;  %v1037_v18 = vld [vmem:[#allocation5 + $0x10] sm:$0xff]   ;;  %s1142_s21 = smov 64  }
  0x4b   : > { %v320_v11 = vsel %vm317_vm0, %v318_v4, %v319_v5  ;;  %v324_v12 = vsel %vm317_vm0, 0.0, %v318_v4  ;;  %v328_v13 = vsel %vm325_vm1, %v326_v6, %v327_v7  ;;  %935 = vmatpush3.bf16.msra.mxu0 %v1035_v9  ;;  %v1038_v21 = vld [vmem:[#allocation5 + $0x18] sm:$0xff]   ;;  %v1039_v22 = vld [vmem:[#allocation5 + $0x20] sm:$0xff]   ;;  %v1040_v23 = vld [vmem:[#allocation5 + $0x28] sm:$0xff]   ;;  %vm353_vm2 = vcmask 261120  }
  0x4c   : > { %v1015_v15 = vpack.i.bf16 %v320_v11, %v324_v12  ;;  %v330_v16 = vsel %vm325_vm1, %v327_v7, %v329_v8  ;;  %936 = vmatprep.subr.bf16.mxu0 %v1036_v10  ;;  %v322_v19 = vsel %vm317_vm0, %v319_v5, %v321_v14  ;;  %v332_v20 = vsel %vm325_vm1, %v329_v8, 0.0  ;;  %v1041_v24 = vld [vmem:[#allocation5 + $0x30] sm:$0xff]   ;;  %v1042_v25 = vld [vmem:[#allocation5 + $0x38] sm:$0xff]   ;;  %v871_v45 = vld [vmem:[%s1344_s2] ss:$0 sm:$0xff] }
  0x4d   : > { %v1020_v17 = vpack.i.bf16 %v330_v16, %v328_v13  ;;  %vm357_vm3 = vcmask 523264   ;;  %vm361_vm4 = vcmask 785408   ;;  %v310_v50 = vand.u32 127, %v309_v49  ;;  %v1043_v58 = vld [vmem:[#allocation5 + $0x40] sm:$0xff]   ;;  %v1044_v59 = vld [vmem:[#allocation5 + $0x48] sm:$0xff]   ;;  %v1045_v60 = vld [vmem:[#allocation5 + $0x50] sm:$0xff]  }
  0x4e   : > { %1016 = vrot.lane.b32.xlu0 %v1015_v15, %s1141_s20  ;;  %vm1282_vm5 = vmpackc.low %vm361_vm4, %vm361_vm4  ;;  %v1143_v53 = vmov 0.0   ;;  %954 = vmatprep.subr.bf16.mxu1 %v1043_v58  ;;  %v1046_v61 = vld [vmem:[#allocation5 + $0x58] sm:$0xff]   ;;  %v1047_v62 = vld [vmem:[#allocation5 + $0x60] sm:$0xff]   ;;  %vm560_vm7 = vcmask 1042432   ;;  %vm568_vm8 = vcmask 1044480   ;;  %vm777_vm9 = vcmask 7168  }
  0x4f   : > { %1021 = vrot.lane.b32.xlu1 %v1020_v17, %s1142_s21  ;;  %937 = vmatpush3.bf16.msra.mxu0 %v1036_v10  ;;  %vm311_vm6 = vcmp.lt.s32.totalorder %v310_v50, 32  ;;  %v886_v5 = vld [vmem:[%s1345_s3] ss:$0 sm:$0xff]  ;;  %v1049_v9 = vld [vmem:[#allocation5 + $0x70] sm:$0xff]   ;;  %v561_v12 = vrot.slane %v1143_v53, 5  ;;  %v1050_v13 = vld [vmem:[#allocation5 + $0x78] sm:$0xff]  }
  0x50   : > { %938 = vmatprep.subr.bf16.mxu0 %v1037_v18  ;;  %v1295_v54 = vsel %vm311_vm6, 1.0, %v1143_v53  ;;  %955 = vmatpush3.bf16.msra.mxu1 %v1043_v58  ;;  %v887_v7 = vld [vmem:[%s1346_s4] ss:$0 sm:$0xff]  ;;  %v569_v17 = vrot.slane %v1143_v53, 3 }
  0x51   : > { %956 = vmatprep.subr.bf16.mxu1 %v1044_v59  ;;  %v567_v16 = vsel %vm560_vm7, 0.0, %v561_v12 }
  0x52   : > { %338 = vrot.lane.b32.xlu0 %v322_v19, %s1141_s20 }
  0x53   : > { %348 = vrot.lane.b32.xlu1 %v332_v20, %s1142_s21  ;;  %939 = vmatpush3.bf16.msra.mxu0 %v1037_v18 }
  0x54   : > { %940 = vmatprep.subr.bf16.mxu0 %v1038_v21  ;;  %957 = vmatpush3.bf16.msra.mxu1 %v1044_v59  ;;  %v907_v59 = vld [vmem:[%s1346_s4 + $0x1] ss:$0 sm:$0xff] }
  0x55   : > { %958 = vmatprep.subr.bf16.mxu1 %v1045_v60 }
  0x57   : > { %941 = vmatpush3.bf16.msra.mxu0 %v1038_v21 }
  0x58   : > { %942 = vmatprep.subr.bf16.mxu0 %v1039_v22  ;;  %959 = vmatpush3.bf16.msra.mxu1 %v1045_v60 }
  0x59   : > { %960 = vmatprep.subr.bf16.mxu1 %v1046_v61 }
  0x5b   : > { %943 = vmatpush3.bf16.msra.mxu0 %v1039_v22  ;;  %v575_v22 = vsel %vm568_vm8, %v569_v17, 0.0 }
  0x5c   : > { %944 = vmatprep.subr.bf16.mxu0 %v1040_v23  ;;  %961 = vmatpush3.bf16.msra.mxu1 %v1046_v61 }
  0x5d   : > { %962 = vmatprep.subr.bf16.mxu1 %v1047_v62 }
  0x5f   : > { %945 = vmatpush3.bf16.msra.mxu0 %v1040_v23 }
  0x60   : > { %946 = vmatprep.subr.bf16.mxu0 %v1041_v24  ;;  %963 = vmatpush3.bf16.msra.mxu1 %v1047_v62  ;;  %v908_v62 = vld [vmem:[%s1347_s5] ss:$0 sm:$0xff] }
  0x63   : > { %947 = vmatpush3.bf16.msra.mxu0 %v1041_v24 }
  0x64   : > { %948 = vmatprep.subr.bf16.mxu0 %v1042_v25 }
  0x67   : > { %949 = vmatpush3.bf16.msra.mxu0 %v1042_v25 }
  0xc0   : > { %v1017_v26 = vpop.permute.xlu0 %1016 }
  0xc1   : > { %v1019_v27 = vunpack.i.h.bf16 %v1017_v26  ;;  %v1018_v28 = vunpack.i.l.bf16 %v1017_v26  ;;  %v1022_v29 = vpop.permute.xlu1 %1021 }
  0xc2   : > { %v1024_v30 = vunpack.i.h.bf16 %v1022_v29  ;;  %v1023_v31 = vunpack.i.l.bf16 %v1022_v29 }
  0xc3   : > { %v354_v32 = vsel %vm353_vm2, %v288_v1, %v1018_v28  ;;  %v355_v33 = vsel %vm353_vm2, %v1263_v2, %v1019_v27 }
  0xc4   : > { %v339_v34 = vpop.permute.xlu0 %338  ;;  %v358_v35 = vsel %vm357_vm3, %v354_v32, %v1023_v31  ;;  %v359_v36 = vsel %vm357_vm3, %v355_v33, %v1024_v30 }
  0xc5   : > { %v356_v38 = vsel %vm353_vm2, %v290_v3, %v339_v34  ;;  %v349_v39 = vpop.permute.xlu1 %348  ;;  %v881_v40 = vpack.c.bf16 %v359_v36, %v358_v35  ;;  %v1048_v3 = vld [vmem:[#allocation5 + $0x68] sm:$0xff]  }
  0xc6   : > { %v360_v41 = vsel %vm357_vm3, %v356_v38, %v349_v39  ;;  %964 = vmatprep.subr.bf16.mxu1 %v1048_v3 }
  0xc7   : > { %v884_v42 = vpack.c.bf16 %v360_v41, %v360_v41  ;;  %950 = vmatprep.mubr.msk.bf16.mxu0 %vm1282_vm5, %v881_v40  ;;  %965 = vmatpush3.bf16.msra.mxu1 %v1048_v3 }
  0xc8   : > { %966 = vmatprep.subr.bf16.mxu1 %v1049_v9 }
  0xc9   : > { %951 = vmatmul.mubr.msk.bf16.vlgmr.msra.gmra.mrb[0].mxu0 %vm1282_vm5, %v884_v42 }
  0xcb   : > { %967 = vmatpush3.bf16.msra.mxu1 %v1049_v9 }
  0xcc   : > { %968 = vmatprep.subr.bf16.mxu1 %v1050_v13 }
  0xcf   : > { %969 = vmatpush3.bf16.msra.mxu1 %v1050_v13 }
 0x19c   : > { %v952_v43 = vpop.f32.mrb[0].mxu0 }
 0x19d   : > { %v472_v44 = vpop.f32.mrb[1].mxu0 }
 0x19e   : > { %v953_v46 = vpop.f32.mrb[2].mxu0  ;;  %v889_v44 = vld [vmem:[%s1344_s2 + $0x1] ss:$0 sm:$0xff] }
 0x19f   : > { %v475_v47 = vpop.f32.mrb[3].mxu0 }
 0x1a0   : > { %v476_v48 = vadd.f32 %v871_v45, %v475_v47 }
 0x1a2   : > { %488 = vadd.xlane.f32.xlu0 %v476_v48 }
 0x22f   : > { %v489_v51 = vpop.xlane.xlu0 %488 }
 0x230   : > { %v493_v52 = vmul.f32 0.03125, %v489_v51 }
 0x232   : > { %v496_v55 = vsub.f32 %v476_v48, %v493_v52 }
 0x234   : > { %v499_v56 = vmul.f32 %v1295_v54, %v496_v55 }
 0x236   : > { %v502_v57 = vmul.f32 %v499_v56, %v496_v55 }
 0x238   : > { %506 = vadd.xlane.f32.xlu1 %v502_v57  ;;  %v905_v57 = vld [vmem:[%s1345_s3 + $0x1] ss:$0 sm:$0xff] }
 0x2c5   : > { %v507_v63 = vpop.xlane.xlu1 %506 }
 0x2c6   : > { %v511_v0 = vmul.f32 0.03125, %v507_v63 }
 0x2c8   : > { %v514_v1 = vadd.f32 1e-05, %v511_v0 }
 0x2ca   : > { %1051 = vrsqrt.f32 %v514_v1  ;;  %v909_v1 = vld [vmem:[#allocation4] ss:$0 sm:$0xff] }
 0x2d4   : > { %v1052_v4 = vpop.eup %1051 }
 0x2d5   : > { %v520_v6 = vmul.f32 %v1052_v4, %v496_v55 }
 0x2d7   : > { %v530_v8 = vmul.f32 %v886_v5, %v520_v6 }
 0x2d9   : > { %v540_v10 = vadd.f32 %v887_v7, %v530_v8 }
 0x2db   : > { %v543_v11 = vmax.f32 %v540_v10, 0.0 }
 0x2dd   : > { %v546_v14 = vadd.f32 %v543_v11, %v1263_v2 }
 0x2df   : > { %v562_v15 = vrot.slane %v546_v14, 5  ;;  %v570_v18 = vrot.slane %v546_v14, 3 }
 0x2e1   : > { %v565_v19 = vsel %vm560_vm7, %v562_v15, %v561_v12  ;;  %v563_v20 = vsel %vm560_vm7, %v561_v12, %v562_v15  ;;  %v571_v23 = vsel %vm568_vm8, %v569_v17, %v570_v18  ;;  %v573_v24 = vsel %vm568_vm8, %v570_v18, %v569_v17 }
 0x2e2   : > { %581 = vrot.lane.b32.xlu1 %v565_v19, %s1141_s20  ;;  %v1025_v21 = vpack.i.bf16 %v563_v20, %v567_v16  ;;  %v1030_v2 = vpack.i.bf16 %v573_v24, %v571_v23 }
 0x2e4   : > { %1026 = vrot.lane.b32.xlu0 %v1025_v21, %s1141_s20 }
 0x2e6   : > { %591 = vrot.lane.b32.xlu1 %v575_v22, %s1142_s21 }
 0x2e8   : > { %1031 = vrot.lane.b32.xlu0 %v1030_v2, %s1142_s21 }
 0x354   : > { %v582_v25 = vpop.permute.xlu1 %581 }
 0x355   : > { %v598_v31 = vsel %vm353_vm2, 0.0, %v582_v25 }
 0x356   : > { %v1027_v26 = vpop.permute.xlu0 %1026 }
 0x357   : > { %v1029_v27 = vunpack.i.h.bf16 %v1027_v26  ;;  %v1028_v28 = vunpack.i.l.bf16 %v1027_v26 }
 0x358   : > { %v592_v29 = vpop.permute.xlu1 %591 }
 0x359   : > { %v596_v34 = vsel %vm353_vm2, 0.0, %v1028_v28  ;;  %v601_v35 = vsel %vm357_vm3, %v598_v31, %v592_v29  ;;  %v597_v36 = vsel %vm353_vm2, %v546_v14, %v1029_v27 }
 0x35a   : > { %v1032_v30 = vpop.permute.xlu0 %1031  ;;  %v902_v41 = vpack.c.bf16 %v601_v35, %v601_v35 }
 0x35b   : > { %v1034_v32 = vunpack.i.h.bf16 %v1032_v30  ;;  %v1033_v33 = vunpack.i.l.bf16 %v1032_v30 }
 0x35d   : > { %v599_v38 = vsel %vm357_vm3, %v596_v34, %v1033_v33  ;;  %v600_v39 = vsel %vm357_vm3, %v597_v36, %v1034_v32 }
 0x35e   : > { %v899_v40 = vpack.c.bf16 %v600_v39, %v599_v38 }
 0x360   : > { %970 = vmatprep.mubr.msk.bf16.mxu1 %vm1282_vm5, %v899_v40 }
 0x361   : > { %971 = vmatmul.mubr.msk.bf16.vlgmr.msra.gmra.mrb[0].mxu1 %vm1282_vm5, %v902_v41 }
 0x434   : > { %v972_v42 = vpop.f32.mrb[0].mxu1 }
 0x435   : > { %v714_v43 = vpop.f32.mrb[1].mxu1 }
 0x436   : > { %v973_v45 = vpop.f32.mrb[2].mxu1 }
 0x437   : > { %v716_v46 = vpop.f32.mrb[3].mxu1 }
 0x438   : > { %v717_v47 = vadd.f32 %v889_v44, %v716_v46 }
 0x43a   : > { %726 = vadd.xlane.f32.xlu0 %v717_v47 }
 0x4c7   : > { %v727_v48 = vpop.xlane.xlu0 %726 }
 0x4c8   : > { %v728_v49 = vmul.f32 0.03125, %v727_v48 }
 0x4ca   : > { %v729_v50 = vsub.f32 %v717_v47, %v728_v49 }
 0x4cc   : > { %v730_v51 = vmul.f32 %v1295_v54, %v729_v50 }
 0x4ce   : > { %v731_v52 = vmul.f32 %v730_v51, %v729_v50 }
 0x4d0   : > { %732 = vadd.xlane.f32.xlu1 %v731_v52 }
 0x55d   : > { %v733_v53 = vpop.xlane.xlu1 %732 }
 0x55e   : > { %v734_v37 = vmul.f32 0.03125, %v733_v53 }
 0x560   : > { %v735_v55 = vadd.f32 1e-05, %v734_v37 }
 0x562   : > { %1053 = vrsqrt.f32 %v735_v55 }
 0x56c   : > { %v1054_v56 = vpop.eup %1053 }
 0x56d   : > { %v737_v58 = vmul.f32 %v1054_v56, %v729_v50 }
 0x56f   : > { %v746_v60 = vmul.f32 %v905_v57, %v737_v58 }
 0x571   : > { %v755_v61 = vadd.f32 %v907_v59, %v746_v60 }
 0x573   : > { %v756_v54 = vmax.f32 %v755_v61, 0.0 }
 0x575   : > { %v757_v63 = vadd.f32 %v756_v54, %v546_v14 }
 0x577   : > { %v766_v0 = vmul.f32 %v908_v62, %v757_v63 }
 0x579   : > { %767 = vadd.xlane.f32.xlu0 %v766_v0 }
 0x606   : > { %v768_v3 = vpop.xlane.xlu0 %767 }
 0x607   : > { %v776_v4 = vadd.f32 %v909_v1, %v768_v3 }
 0x609   : > { %778 = vst.msk [vmem:[%s1255_s14] sm:$0xff] %vm777_vm9, %v776_v4 }
 0x60a PF: > { %s20_s28 = sadd.s32 1, %s1135_s28   ;;  %s1360_s26 = smov %s1131_s27 }
 0x60b   : > { %p17_p9 = scmp.ge.s32.totalorder %s20_s28, 4   ;;  %s1361_s27 = smov %s1363_s29 }
 0x60d   :  { %19 = sbr.rel (!%p17_p9) target bundleno = 5 (0x5), region = 85 }
 0x614   :  { %804 = vsyncpa [#allocation6], 1 }
 0x615   :  { %806 = vsyncpa [#allocation6 + $0x1], 1 }
 0x616   :  { %807 = vsyncmov [#allocation3] }
 0x619   :  { %s808_s17 = vpop.sfrf %807 }
 0x61a   :  { %p912_p3 = scmp.ne.s32.totalorder %s808_s17, 0 }
 0x61c   :  { %812 = shalt.err (%p912_p3)  }

</bundles_post_ra>
